<compile_context>
chip_gen: v5e
topology: v5e:2x2
jax: 0.10.0
libtpu: 0.0.40
codegen_flags: <defaults>
</compile_context>

<pallas_src>
import jax
import jax.numpy as jnp
from jax.experimental import pallas as pl
from jax.experimental.pallas import tpu as pltpu

EPS = float(jnp.finfo(jnp.float32).eps)

# Per-buffer tile targets (elements).  512 x 4096 f32 = 8 MiB per tile.
_ROW_TILE_TARGET = 512
_COL_TILE_TARGET = 4096
_VMEM_LIMIT_BYTES = 48 * 1024 * 1024


def make_position_buffer(seq_len: int, dim_emb: int, base: int = 10000,
                         eps: float = EPS) -> jnp.ndarray:
    """Deterministic buffer setup (mirrors the PyTorch __init__).

    Note: like the PyTorch module, eps is added to the denominator
    (base**(2i/D) + eps), which slightly perturbs the textbook sinusoid.
    """
    indices = jnp.arange(0, seq_len, dtype=jnp.float32)                       # (S,)
    scale = 1.0 / (base ** (jnp.arange(0, dim_emb, 2, dtype=jnp.float32)
                            / dim_emb) + eps)                                 # (D/2,)
    angles = indices[:, None] * scale[None, :]                                # (S, D/2)
    # interleave: even lanes = sin, odd lanes = cos
    pos = jnp.stack([jnp.sin(angles), jnp.cos(angles)], axis=-1)              # (S, D/2, 2)
    pos = pos.reshape(seq_len, dim_emb)                                       # (S, D)
    return pos[None, None, :, :].astype(jnp.float32)                          # (1,1,S,D)


def _pick_tile(total: int, target: int, align: int) -> int:
    """Largest tile <= target that is a multiple of `align` and divides `total`.

    Falls back to the full extent (always a legal TPU block shape).
    """
    if total <= target:
        return total
    t = (min(target, total) // align) * align
    while t >= align:
        if total % t == 0:
            return t
        t -= align
    return total


def _add_pos_kernel(x_ref, pos_ref, o_ref):
    # (row_tile, col_tile) + (1, col_tile) broadcast add; explicit cast keeps
    # bf16 inputs bf16 on the store.
    o_ref[...] = (x_ref[...] + pos_ref[...]).astype(o_ref.dtype)


def cosine_positional_encoding(x: jnp.ndarray, position: jnp.ndarray,
                               *, donate_x: bool = False) -> jnp.ndarray:
    B, H, S, D = x.shape
    assert position.shape == (1, 1, S, D)
    rows, cols = B * H, S * D

    # Free, contiguous reshapes to a lane-dense 2D problem.
    x2 = x.reshape(rows, cols)
    pos2 = position.reshape(1, cols).astype(x.dtype)

    row_tile = _pick_tile(rows, _ROW_TILE_TARGET, 8)
    col_tile = _pick_tile(cols, _COL_TILE_TARGET, 128)
    grid = (rows // row_tile, cols // col_tile)

    out2 = pl.pallas_call(
        _add_pos_kernel,
        out_shape=jax.ShapeDtypeStruct((rows, cols), x.dtype),
        grid_spec=pltpu.PrefetchScalarGridSpec(
            num_scalar_prefetch=0,
            grid=grid,
            in_specs=[
                pl.BlockSpec((row_tile, col_tile), lambda i, j: (i, j)),
                # positional buffer: shared across row tiles, tiled along cols
                pl.BlockSpec((1, col_tile), lambda i, j: (0, j)),
            ],
            out_specs=pl.BlockSpec((row_tile, col_tile), lambda i, j: (i, j)),
        ),
        compiler_params=pltpu.CompilerParams(
            dimension_semantics=("parallel", "parallel"),
            vmem_limit_bytes=_VMEM_LIMIT_BYTES,
        ),
        input_output_aliases=({0: 0} if donate_x else {}),
    )(x2, pos2)

    return out2.reshape(B, H, S, D)


if __name__ == "__main__":
    batch, num_heads, seq_len, dim_emb = 2, 4, 16, 32

    key = jax.random.PRNGKey(0)
    x = jax.random.normal(key, (batch, num_heads, seq_len, dim_emb), dtype=jnp.float32)

    position = make_position_buffer(seq_len, dim_emb)

    # f32 path
    out = cosine_positional_encoding(x, position)
    out = jax.block_until_ready(out)
    ref = x + position
    assert out.shape == (batch, num_heads, seq_len, dim_emb)
    assert jnp.allclose(out, ref, atol=1e-6, rtol=1e-6)

    # bf16 path (dtype-safe add + store)
    x_bf16 = x.astype(jnp.bfloat16)
    out_bf16 = jax.block_until_ready(cosine_positional_encoding(x_bf16, position))
    ref_bf16 = x_bf16 + position.astype(jnp.bfloat16)
    assert out_bf16.dtype == jnp.bfloat16
    assert jnp.allclose(out_bf16.astype(jnp.float32), ref_bf16.astype(jnp.float32),
                        atol=1e-2, rtol=1e-2)

    print("KERNEL_OK")
</pallas_src>

<mosaic_0001>
module attributes {stable_mosaic.version = 11 : i64} {
  func.func @_add_pos_kernel(%arg0: i32, %arg1: i32, %arg2: memref<8x512xf32, #tpu.memory_space<vmem>>, %arg3: memref<1x512xf32, #tpu.memory_space<vmem>>, %arg4: memref<8x512xf32, #tpu.memory_space<vmem>>) attributes {dimension_semantics = [#tpu.dimension_semantics<parallel>, #tpu.dimension_semantics<parallel>], iteration_bounds = array<i64: 1, 1>, scalar_prefetch = 0 : i64, scratch_operands = 0 : i64, tpu.core_type = #tpu.core_type<tc>, window_params = [{transform_indices = @transform_0, window_bounds = array<i64: 8, 512>}, {transform_indices = @transform_1, window_bounds = array<i64: 1, 512>}, {transform_indices = @transform_2, window_bounds = array<i64: 8, 512>}]} {
    %c0 = arith.constant 0 : index
    %c0_0 = arith.constant 0 : index
    %0 = vector.load %arg2[%c0, %c0_0] : memref<8x512xf32, #tpu.memory_space<vmem>>, vector<8x512xf32>
    %c0_1 = arith.constant 0 : index
    %c0_2 = arith.constant 0 : index
    %1 = vector.load %arg3[%c0_1, %c0_2] : memref<1x512xf32, #tpu.memory_space<vmem>>, vector<1x512xf32>
    %2 = vector.broadcast %1 : vector<1x512xf32> to vector<8x512xf32>
    %3 = arith.addf %0, %2 : vector<8x512xf32>
    %c0_3 = arith.constant 0 : index
    %c0_4 = arith.constant 0 : index
    %4 = vector.load %arg4[%c0_3, %c0_4] : memref<8x512xf32, #tpu.memory_space<vmem>>, vector<8x512xf32>
    tpu.vector_store %arg4[%c0_3, %c0_4], %3 {strides = array<i32>} : memref<8x512xf32, #tpu.memory_space<vmem>>, vector<8x512xf32>,
    return
  }
  func.func @transform_0(%arg0: i32, %arg1: i32) -> (i32, i32) {
    %c0_i32 = arith.constant 0 : i32
    return %arg0, %arg1 : i32, i32
  }
  func.func @transform_1(%arg0: i32, %arg1: i32) -> (i32, i32) {
    %c0_i32 = arith.constant 0 : i32
    %c0_i32_0 = arith.constant 0 : i32
    return %c0_i32, %arg1 : i32, i32
  }
  func.func @transform_2(%arg0: i32, %arg1: i32) -> (i32, i32) {
    %c0_i32 = arith.constant 0 : i32
    return %arg0, %arg1 : i32, i32
  }
}

</mosaic_0001>

<bundles_post_ra>
// kernel: tpu_custom_call.1
= control target key start
LH: loop header
LB: loop body
LE: loop exit
PB: predicated region body
PF: predicated region fallthrough
CT: control target
= control target key end

     0   :  { %7 = vsyncpa [#allocation3], 0  ;;  %s188_s0 = inlined_call_operand.hbm [shape: f32[8,512], index: 0, kind: input, shape index: {}]   ;;  %s189_s1 = inlined_call_operand.hbm [shape: f32[1,512], index: 1, kind: input, shape index: {}]   ;;  %s190_s2 = inlined_call_operand.hbm [shape: f32[8,512], index: 2, kind: output, shape index: {}]  }
   0x1   :  { %8 = vsyncpa [#allocation6], 0 }
   0x2   :  { %9 = vsyncpa [#allocation4], 0  ;;  %s15_s11 = sshll.u32 %s188_s0, 4  ;;  %s161_s12 = smov [#allocation2]   ;;  %s16_s11 = int_to_ptr.hbm [resolvable:$true] %s15_s11 }
   0x3   :  { %s17_s13 = sshll.u32 %s161_s12, 4  ;;  %s26_s16 = sshll.u32 %s189_s1, 4  ;;  %s18_s13 = int_to_ptr.vmem [resolvable:$true] %s17_s13  ;;  %s27_s16 = int_to_ptr.hbm [resolvable:$true] %s26_s16 }
   0x4   :  { %20 = dma.hbm_to_vmem [thread:$0]  %s16_s11, 512, %s18_s13, [#allocation3]  }
   0x5   :  { %s162_s17 = smov [#allocation5]  }
   0x6   :  { %s28_s18 = sshll.u32 %s162_s17, 4  ;;  %s29_s18 = int_to_ptr.vmem [resolvable:$true] %s28_s18 }
   0x7   :  { %31 = dma.hbm_to_vmem [thread:$0]  %s27_s16, 64, %s29_s18, [#allocation6]  }
   0x8   :  { %155 = dma.done.wait [#allocation3], 512  }
   0x9   :  { %156 = vsyncadd [#allocation3], 4294966784 }
   0xa   :  { %157 = dma.done.wait [#allocation6], 64  }
   0xb   :  { %158 = vsyncadd [#allocation6], 4294967232  ;;  %v40_v0 = vld [vmem:[#allocation2] sm:$0xff]  ;;  %v41_v2 = vld [vmem:[#allocation2 + $0x8] sm:$0xff]  ;;  %s163_s0 = smov [#allocation7]   ;;  %s69_s21 = sshll.u32 %s190_s2, 4  ;;  %s70_s21 = int_to_ptr.hbm [resolvable:$true] %s69_s21 }
   0xc   :  { %v44_v1 = vld [vmem:[#allocation5] sm:$0xf]  ;;  %v42_v5 = vld [vmem:[#allocation2 + $0x10] sm:$0xff]  ;;  %v43_v7 = vld [vmem:[#allocation2 + $0x18] sm:$0xff]  ;;  %s67_s1 = sshll.u32 %s163_s0, 4  ;;  %s68_s1 = int_to_ptr.vmem [resolvable:$true] %s67_s1 }
   0xd   :  { %v46_v3 = vperm.slane %v44_v1, 0  ;;  %v47_v4 = vperm.slane %v44_v1, 1  ;;  %v48_v6 = vperm.slane %v44_v1, 2  ;;  %v49_v8 = vperm.slane %v44_v1, 3 }
   0xf   :  { %v54_v9 = vadd.f32 %v46_v3, %v40_v0  ;;  %v55_v10 = vadd.f32 %v47_v4, %v41_v2  ;;  %v56_v11 = vadd.f32 %v48_v6, %v42_v5  ;;  %v57_v12 = vadd.f32 %v49_v8, %v43_v7 }
  0x11   :  { %58 = vst [vmem:[#allocation7] sm:$0xff] %v54_v9 }
  0x12   :  { %59 = vst [vmem:[#allocation7 + $0x8] sm:$0xff] %v55_v10 }
  0x13   :  { %60 = vst [vmem:[#allocation7 + $0x10] sm:$0xff] %v56_v11 }
  0x14   :  { %61 = vst [vmem:[#allocation7 + $0x18] sm:$0xff] %v57_v12 }
  0x15   :  { %72 = dma.vmem_to_hbm [thread:$0]  %s68_s1, 512, %s70_s21, [#allocation4]  }
  0x16   :  { %159 = dma.done.wait [#allocation4], 512  }
  0x17   :  { %160 = vsyncadd [#allocation4], 4294966784 }
  0x18   :  { %77 = vsyncpa [#allocation3], 1 }
  0x19   :  { %78 = vsyncpa [#allocation6], 1 }
  0x1a   :  { %79 = vsyncpa [#allocation4], 1 }

</bundles_post_ra>
